<compile_context>
chip_gen: v6e
topology: v6e:2x2x1
jax: 0.10.0
libtpu: 0.0.40
codegen_flags: <defaults>
</compile_context>

<pallas_src>
import functools

import numpy as np
import jax
import jax.numpy as jnp
from jax.experimental import pallas as pl
from jax.experimental.pallas import tpu as pltpu

_TR_CAP = 1024  # hard cap on rows of 128 cells per grid step


def _cdiv(a, b):
    return -(-a // b)


def _round_up(a, b):
    return _cdiv(a, b) * b


def _yolo_loss_kernel(pred_ref, targ_ref, anc_ref, out_ref, *, num_classes):
    """One grid step = one (anchor, row-block). Writes 6 partial sums.

    Partial-sum rows of the (8, 128) output block:
      [0] sum no-obj BCE-with-logits     [1] no-obj element count
      [2] sum obj (iou - sig(p_obj))^2   [3] obj element count
      [4] sum obj coord squared errors   [5] sum obj cross-entropy
    """
    f32 = jnp.float32
    a = pl.program_id(0)  # anchor index

    # Scalar anchor dims for this whole block (SMEM lookup, no per-cell array).
    aw = anc_ref[a, 0]
    ah = anc_ref[a, 1]

    p_obj = pred_ref[0, 0].astype(f32)
    t_obj = targ_ref[0, 0].astype(f32)

    obj = t_obj == 1.0
    noobj = t_obj == 0.0           # pad cells hold 0.5 -> neither obj nor noobj
    obj_f = obj.astype(f32)
    noobj_f = noobj.astype(f32)
    cnt_obj = jnp.sum(obj_f)
    cnt_noobj = jnp.sum(noobj_f)

    # ---- no-obj loss: BCE-with-logits; counted cells have target exactly 0,
    # so the -x*z term vanishes.  exp(-|x|) is shared with the obj sigmoid.
    ex = jnp.exp(-jnp.abs(p_obj))
    bce = jnp.maximum(p_obj, 0.0) + jnp.log(1.0 + ex)
    sum_noobj = jnp.sum(bce * noobj_f)

    r8 = jax.lax.broadcasted_iota(jnp.int32, (8, 128), 0)
    base = jnp.where(r8 == 0, sum_noobj,
                     jnp.where(r8 == 1, cnt_noobj,
                               jnp.where(r8 == 3, cnt_obj, 0.0)))
    out_ref[0, 0] = base

    # ---- everything below is only needed where obj; skip whole blocks that
    # have no objects (saves ~(C+9) transcendentals per cell on the EUP).
    @pl.when(cnt_obj > 0.0)
    def _():
        inv_1p_ex = 1.0 / (1.0 + ex)
        sig_obj = jnp.where(p_obj >= 0.0, inv_1p_ex, ex * inv_1p_ex)

        p_x = pred_ref[0, 1].astype(f32)
        p_y = pred_ref[0, 2].astype(f32)
        # Sanitize exp() inputs on non-obj cells so a huge logit there can
        # never produce inf*0 = NaN in the masked sums.
        p_w = jnp.where(obj, pred_ref[0, 3].astype(f32), 0.0)
        p_h = jnp.where(obj, pred_ref[0, 4].astype(f32), 0.0)
        t_x = targ_ref[0, 1].astype(f32)
        t_y = targ_ref[0, 2].astype(f32)
        t_w = targ_ref[0, 3].astype(f32)
        t_h = targ_ref[0, 4].astype(f32)
        t_cls = targ_ref[0, 5].astype(jnp.int32)

        def _sigmoid(v):
            e = jnp.exp(-jnp.abs(v))
            inv = 1.0 / (1.0 + e)
            return jnp.where(v >= 0.0, inv, e * inv)

        # ---- decoded boxes + midpoint IoU (detached in reference) ----
        bx = _sigmoid(p_x)
        by = _sigmoid(p_y)
        bw = jnp.exp(p_w) * aw
        bh = jnp.exp(p_h) * ah

        iw = jnp.maximum(jnp.minimum(bx + 0.5 * bw, t_x + 0.5 * t_w)
                         - jnp.maximum(bx - 0.5 * bw, t_x - 0.5 * t_w), 0.0)
        ih = jnp.maximum(jnp.minimum(by + 0.5 * bh, t_y + 0.5 * t_h)
                         - jnp.maximum(by - 0.5 * bh, t_y - 0.5 * t_h), 0.0)
        inter = iw * ih
        union = jnp.abs(bw * bh) + jnp.abs(t_w * t_h) - inter + 1e-6
        iou = inter * pl.reciprocal(union, approx=True)   # EUP slot, not VPU

        # ---- obj loss: MSE(iou, sigmoid(obj logit)) over obj cells ----
        d_obj = iou - sig_obj
        sum_obj = jnp.sum(d_obj * d_obj * obj_f)

        # ---- coord loss: MSE over [sig(x), sig(y), w_logit, h_logit] ----
        inv_aw = 1.0 / aw
        inv_ah = 1.0 / ah
        dx = bx - t_x
        dy = by - t_y
        dw = p_w - jnp.log(1e-16 + t_w * inv_aw)
        dh = p_h - jnp.log(1e-16 + t_h * inv_ah)
        sum_coord = jnp.sum((dx * dx + dy * dy + dw * dw + dh * dh) * obj_f)

        # ---- class loss: cross-entropy over obj cells (static unroll on C) --
        m = pred_ref[0, 5].astype(f32)
        for c in range(1, num_classes):
            m = jnp.maximum(m, pred_ref[0, 5 + c].astype(f32))
        se = jnp.zeros_like(m)
        picked = jnp.zeros_like(m)
        for c in range(num_classes):
            lc = pred_ref[0, 5 + c].astype(f32)
            se = se + jnp.exp(lc - m)
            picked = jnp.where(t_cls == c, lc, picked)
        ce = (m + jnp.log(se)) - picked
        sum_ce = jnp.sum(ce * obj_f)

        add = jnp.where(r8 == 2, sum_obj,
                        jnp.where(r8 == 4, sum_coord,
                                  jnp.where(r8 == 5, sum_ce, 0.0)))
        out_ref[0, 0] = out_ref[0, 0] + add


def yolo_v3_loss(predictions, targets, anchors,
                 no_obj_weight=0.5, coord_weight=5.0):
    """predictions: (B, A, S, S, 5+C), targets: (B, A, S, S, 6), anchors: (A, 2)."""
    B, A, S1, S2, D = predictions.shape
    C = D - 5
    cells = B * S1 * S2

    pred_isz = predictions.dtype.itemsize
    targ_isz = targets.dtype.itemsize
    sub = max(8, 32 // pred_isz, 32 // targ_isz)   # sublane multiple (f32:8, bf16:16)

    rows = _cdiv(cells, 128)
    rows8 = _round_up(rows, sub)

    # ---- VMEM-aware tile sizing (v5e/v6e: 128 MiB, v7x: 64 MiB per core) ----
    try:
        vmem_bytes = int(getattr(pltpu.get_tpu_info(), "vmem_capacity_bytes",
                                 128 << 20))
    except Exception:  # interpret / non-TPU fallback
        vmem_bytes = 128 << 20
    tile_budget = min(vmem_bytes // 3, 48 << 20)       # double-buffered input blocks
    bytes_per_row = (D * pred_isz + 6 * targ_isz) * 128 * 2
    tr_cap = max(sub, min(_TR_CAP, (tile_budget // bytes_per_row) // sub * sub))

    tr = min(rows8, tr_cap)
    nb = _cdiv(rows8, tr)

    # Guarantee some grid grain (pipeline depth + v7x megacore sharding).
    min_steps = 8           # ~4 steps per TensorCore on a 2-core chip
    if A * nb < min_steps:
        nb_want = min(_cdiv(min_steps, A), rows8 // sub)
        if nb_want > nb:
            tr = _round_up(_cdiv(rows8, nb_want), sub)
            nb = _cdiv(rows8, tr)
    rows_pad = nb * tr
    pad_cells = rows_pad * 128 - cells

    # ---- single repack pass, kept in the input dtype.  The pad value 0.5 for
    # targets makes pad cells neither obj nor noobj and keeps every downstream
    # log/exp/divide finite, so the kernel needs no validity mask and cannot
    # read past `rows_pad`.
    pred_r = jnp.transpose(predictions, (1, 4, 0, 2, 3)).reshape(A, D, cells)
    targ_r = jnp.transpose(targets, (1, 4, 0, 2, 3)).reshape(A, 6, cells)
    if pad_cells:
        pred_r = jnp.pad(pred_r, ((0, 0), (0, 0), (0, pad_cells)))
        targ_r = jnp.pad(targ_r, ((0, 0), (0, 0), (0, pad_cells)),
                         constant_values=0.5)
    pred_r = pred_r.reshape(A, D, rows_pad, 128)
    targ_r = targ_r.reshape(A, 6, rows_pad, 128)

    block_in_bytes = (D * pred_isz + 6 * targ_isz) * tr * 128 * 2
    vmem_need = block_in_bytes + 2 * 8 * 128 * 4 + (4 << 20)
    vmem_limit = int(min(max(vmem_need, 32 << 20), (3 * vmem_bytes) // 4))

    kernel = functools.partial(_yolo_loss_kernel, num_classes=C)

    partials = pl.pallas_call(
        kernel,
        out_shape=jax.ShapeDtypeStruct((A, nb, 8, 128), jnp.float32),
        grid_spec=pltpu.PrefetchScalarGridSpec(
            num_scalar_prefetch=0,
            grid=(A, nb),
            in_specs=[
                pl.BlockSpec((1, D, tr, 128), lambda a, i: (a, 0, i, 0)),
                pl.BlockSpec((1, 6, tr, 128), lambda a, i: (a, 0, i, 0)),
                pl.BlockSpec(memory_space=pltpu.MemorySpace.SMEM),
            ],
            out_specs=pl.BlockSpec((1, 1, 8, 128), lambda a, i: (a, i, 0, 0)),
        ),
        compiler_params=pltpu.CompilerParams(
            dimension_semantics=("parallel", "parallel"),
            vmem_limit_bytes=vmem_limit,
            # Let XLA fuse the repack (transpose/pad/reshape) into the kernel's
            # input DMAs instead of materializing a second HBM copy.
            allow_input_fusion=[True, True, False]),
    )(pred_r, targ_r, anchors.astype(jnp.float32))

    sums = jnp.sum(partials[:, :, :6, 0], axis=(0, 1))          # (6,)
    no_obj_loss = sums[0] / sums[1]
    obj_loss = sums[2] / sums[3]
    coord_loss = sums[4] / (4.0 * sums[3])
    class_loss = sums[5] / sums[3]
    return (no_obj_weight * no_obj_loss + coord_weight * coord_loss
            + obj_loss + class_loss)


def _reference_loss(predictions, targets, anchors,
                    no_obj_weight=0.5, coord_weight=5.0):
    """Pure-JAX reference mirroring the PyTorch forward semantics."""
    sig = jax.nn.sigmoid
    obj = targets[..., 0] == 1.0
    noobj = targets[..., 0] == 0.0

    x = predictions[..., 0]
    z = targets[..., 0]
    bce = jnp.maximum(x, 0.0) - x * z + jnp.log(1.0 + jnp.exp(-jnp.abs(x)))
    no_obj_loss = jnp.sum(jnp.where(noobj, bce, 0.0)) / jnp.sum(noobj)

    anc = anchors[None, :, None, None, :]
    aw, ah = anc[..., 0], anc[..., 1]
    bx, by = sig(predictions[..., 1]), sig(predictions[..., 2])
    bw = jnp.exp(predictions[..., 3]) * aw
    bh = jnp.exp(predictions[..., 4]) * ah
    tx, ty = targets[..., 1], targets[..., 2]
    tw, th = targets[..., 3], targets[..., 4]

    iw = jnp.maximum(jnp.minimum(bx + bw / 2, tx + tw / 2)
                     - jnp.maximum(bx - bw / 2, tx - tw / 2), 0.0)
    ih = jnp.maximum(jnp.minimum(by + bh / 2, ty + th / 2)
                     - jnp.maximum(by - bh / 2, ty - th / 2), 0.0)
    inter = iw * ih
    union = jnp.abs(bw * bh) + jnp.abs(tw * th) - inter + 1e-6
    iou = inter / union
    obj_loss = jnp.sum(jnp.where(obj, (iou - sig(x)) ** 2, 0.0)) / jnp.sum(obj)

    dw = predictions[..., 3] - jnp.log(1e-16 + tw / aw)
    dh = predictions[..., 4] - jnp.log(1e-16 + th / ah)
    coord_sq = (bx - tx) ** 2 + (by - ty) ** 2 + dw ** 2 + dh ** 2
    coord_loss = jnp.sum(jnp.where(obj, coord_sq, 0.0)) / (4.0 * jnp.sum(obj))

    logits = predictions[..., 5:]
    lse = jax.scipy.special.logsumexp(logits, axis=-1)
    label = targets[..., 5].astype(jnp.int32)
    picked = jnp.take_along_axis(logits, label[..., None], axis=-1)[..., 0]
    class_loss = jnp.sum(jnp.where(obj, lse - picked, 0.0)) / jnp.sum(obj)

    return (no_obj_weight * no_obj_loss + coord_weight * coord_loss
            + obj_loss + class_loss)


def _make_inputs(key, B, A, S, C):
    kp, ko, kxy, kwh, kc = jax.random.split(key, 5)
    predictions = 0.5 * jax.random.normal(kp, (B, A, S, S, 5 + C), jnp.float32)
    obj_flag = (jax.random.uniform(ko, (B, A, S, S, 1)) < 0.3).astype(jnp.float32)
    xy = jax.random.uniform(kxy, (B, A, S, S, 2), minval=0.05, maxval=0.95)
    wh = jax.random.uniform(kwh, (B, A, S, S, 2), minval=0.5, maxval=2.0)
    cls = jax.random.randint(kc, (B, A, S, S, 1), 0, C).astype(jnp.float32)
    targets = jnp.concatenate([obj_flag, xy, wh, cls], axis=-1)
    anchors = jnp.array([[1.0, 1.0], [2.0, 1.5], [0.5, 0.8]], jnp.float32)[:A]
    return predictions, targets, anchors


if __name__ == "__main__":
    key = jax.random.PRNGKey(0)
    k1, k2 = jax.random.split(key, 2)

    # Config 1: slabs already a multiple of 8*128 cells -> no wrapper pad.
    p1, t1, a1 = _make_inputs(k1, B=4, A=3, S=16, C=8)
    loss1 = jax.block_until_ready(yolo_v3_loss(p1, t1, a1))
    ref1 = _reference_loss(p1, t1, a1)
    np.testing.assert_allclose(np.asarray(loss1), np.asarray(ref1),
                               rtol=2e-4, atol=2e-4)

    # Config 2: ragged tail (B*S*S % 128 != 0) exercising the sentinel padding.
    p2, t2, a2 = _make_inputs(k2, B=2, A=3, S=13, C=11)
    loss2 = jax.block_until_ready(yolo_v3_loss(p2, t2, a2))
    ref2 = _reference_loss(p2, t2, a2)
    np.testing.assert_allclose(np.asarray(loss2), np.asarray(ref2),
                               rtol=2e-4, atol=2e-4)

    print("KERNEL_OK")
</pallas_src>

<mosaic_0001>
module attributes {stable_mosaic.version = 11 : i64} {
  func.func @_yolo_loss_kernel(%arg0: i32, %arg1: i32, %arg2: memref<1x13x8x128xf32, #tpu.memory_space<vmem>>, %arg3: memref<1x6x8x128xf32, #tpu.memory_space<vmem>>, %arg4: memref<3x2xf32, #tpu.memory_space<smem>>, %arg5: memref<1x1x8x128xf32, #tpu.memory_space<vmem>>) attributes {dimension_semantics = [#tpu.dimension_semantics<parallel>, #tpu.dimension_semantics<parallel>], iteration_bounds = array<i64: 3, 1>, scalar_prefetch = 0 : i64, scratch_operands = 0 : i64, tpu.core_type = #tpu.core_type<tc>, window_params = [{transform_indices = @transform_0, window_bounds = array<i64: 1, 13, 8, 128>}, {transform_indices = @transform_1, window_bounds = array<i64: 1, 6, 8, 128>}, {transform_indices = @transform_2, window_bounds = array<i64: 3, 2>}, {transform_indices = @transform_3, window_bounds = array<i64: 1, 1, 8, 128>}]} {
    %0 = arith.index_cast %arg0 : i32 to index
    %c0 = arith.constant 0 : index
    %1 = memref.load %arg4[%0, %c0] : memref<3x2xf32, #tpu.memory_space<smem>>
    %2 = arith.index_cast %arg0 : i32 to index
    %c1 = arith.constant 1 : index
    %3 = memref.load %arg4[%2, %c1] : memref<3x2xf32, #tpu.memory_space<smem>>
    %c0_0 = arith.constant 0 : index
    %c0_1 = arith.constant 0 : index
    %c0_2 = arith.constant 0 : index
    %c0_3 = arith.constant 0 : index
    %4 = vector.load %arg2[%c0_0, %c0_1, %c0_2, %c0_3] : memref<1x13x8x128xf32, #tpu.memory_space<vmem>>, vector<1x1x8x128xf32>
    %5 = vector.shape_cast %4 : vector<1x1x8x128xf32> to vector<8x128xf32>
    %c0_4 = arith.constant 0 : index
    %c0_5 = arith.constant 0 : index
    %c0_6 = arith.constant 0 : index
    %c0_7 = arith.constant 0 : index
    %6 = vector.load %arg3[%c0_4, %c0_5, %c0_6, %c0_7] : memref<1x6x8x128xf32, #tpu.memory_space<vmem>>, vector<1x1x8x128xf32>
    %7 = vector.shape_cast %6 : vector<1x1x8x128xf32> to vector<8x128xf32>
    %cst = arith.constant 1.000000e+00 : f32
    %8 = vector.broadcast %cst : f32 to vector<8x128xf32>
    %9 = arith.cmpf oeq, %7, %8 : vector<8x128xf32>
    %cst_8 = arith.constant 0.000000e+00 : f32
    %10 = vector.broadcast %cst_8 : f32 to vector<8x128xf32>
    %11 = arith.cmpf oeq, %7, %10 : vector<8x128xf32>
    %12 = arith.extui %9 : vector<8x128xi1> to vector<8x128xi32>
    %13 = arith.sitofp %12 : vector<8x128xi32> to vector<8x128xf32>
    %14 = arith.extui %11 : vector<8x128xi1> to vector<8x128xi32>
    %15 = arith.sitofp %14 : vector<8x128xi32> to vector<8x128xf32>
    %16 = vector.shape_cast %13 : vector<8x128xf32> to vector<1x8x128xf32>
    %cst_9 = arith.constant dense<0.000000e+00> : vector<1xf32>
    %17 = vector.multi_reduction <add>, %16, %cst_9 [1, 2] : vector<1x8x128xf32> to vector<1xf32>
    %18 = vector.shape_cast %17 : vector<1xf32> to vector<1x1x1xf32>
    %19 = vector.extract %18[0, 0, 0] : f32 from vector<1x1x1xf32>
    %20 = vector.shape_cast %15 : vector<8x128xf32> to vector<1x8x128xf32>
    %cst_10 = arith.constant dense<0.000000e+00> : vector<1xf32>
    %21 = vector.multi_reduction <add>, %20, %cst_10 [1, 2] : vector<1x8x128xf32> to vector<1xf32>
    %22 = vector.shape_cast %21 : vector<1xf32> to vector<1x1x1xf32>
    %23 = vector.extract %22[0, 0, 0] : f32 from vector<1x1x1xf32>
    %24 = math.absf %5 : vector<8x128xf32>
    %cst_11 = arith.constant 0.000000e+00 : f32
    %25 = vector.broadcast %cst_11 : f32 to vector<8x128xf32>
    %26 = arith.subf %25, %24 : vector<8x128xf32>
    %27 = math.exp %26 : vector<8x128xf32>
    %cst_12 = arith.constant 0.000000e+00 : f32
    %28 = vector.broadcast %cst_12 : f32 to vector<8x128xf32>
    %29 = arith.maximumf %5, %28 : vector<8x128xf32>
    %cst_13 = arith.constant 1.000000e+00 : f32
    %30 = vector.broadcast %cst_13 : f32 to vector<8x128xf32>
    %31 = arith.addf %30, %27 : vector<8x128xf32>
    %32 = math.log %31 : vector<8x128xf32>
    %33 = arith.addf %29, %32 : vector<8x128xf32>
    %34 = arith.mulf %33, %15 : vector<8x128xf32>
    %35 = vector.shape_cast %34 : vector<8x128xf32> to vector<1x8x128xf32>
    %cst_14 = arith.constant dense<0.000000e+00> : vector<1xf32>
    %36 = vector.multi_reduction <add>, %35, %cst_14 [1, 2] : vector<1x8x128xf32> to vector<1xf32>
    %37 = vector.shape_cast %36 : vector<1xf32> to vector<1x1x1xf32>
    %38 = vector.extract %37[0, 0, 0] : f32 from vector<1x1x1xf32>
    %39 = tpu.iota {dimensions = array<i32: 0>} : vector<8x128xi32>
    %c0_i32 = arith.constant 0 : i32
    %40 = vector.broadcast %c0_i32 : i32 to vector<8x128xi32>
    %41 = arith.cmpi eq, %39, %40 : vector<8x128xi32>
    %c1_i32 = arith.constant 1 : i32
    %42 = vector.broadcast %c1_i32 : i32 to vector<8x128xi32>
    %43 = arith.cmpi eq, %39, %42 : vector<8x128xi32>
    %c3_i32 = arith.constant 3 : i32
    %44 = vector.broadcast %c3_i32 : i32 to vector<8x128xi32>
    %45 = arith.cmpi eq, %39, %44 : vector<8x128xi32>
    %cst_15 = arith.constant 0.000000e+00 : f32
    %46 = vector.broadcast %19 : f32 to vector<8x128xf32>
    %47 = vector.broadcast %cst_15 : f32 to vector<8x128xf32>
    %48 = arith.select %45, %46, %47 : vector<8x128xi1>, vector<8x128xf32>
    %49 = vector.broadcast %23 : f32 to vector<8x128xf32>
    %50 = arith.select %43, %49, %48 : vector<8x128xi1>, vector<8x128xf32>
    %51 = vector.broadcast %38 : f32 to vector<8x128xf32>
    %52 = arith.select %41, %51, %50 : vector<8x128xi1>, vector<8x128xf32>
    %c0_16 = arith.constant 0 : index
    %c0_17 = arith.constant 0 : index
    %c0_18 = arith.constant 0 : index
    %c0_19 = arith.constant 0 : index
    %53 = vector.load %arg5[%c0_16, %c0_17, %c0_18, %c0_19] : memref<1x1x8x128xf32, #tpu.memory_space<vmem>>, vector<1x1x8x128xf32>
    %54 = vector.shape_cast %53 : vector<1x1x8x128xf32> to vector<8x128xf32>
    %55 = vector.shape_cast %52 : vector<8x128xf32> to vector<1x1x8x128xf32>
    tpu.vector_store %arg5[%c0_16, %c0_17, %c0_18, %c0_19], %55 {strides = array<i32>} : memref<1x1x8x128xf32, #tpu.memory_space<vmem>>, vector<1x1x8x128xf32>,
    %cst_20 = arith.constant 0.000000e+00 : f32
    %56 = arith.cmpf ogt, %19, %cst_20 : f32
    %57 = arith.extui %56 : i1 to i32
    %c0_i32_21 = arith.constant 0 : i32
    %58 = arith.cmpi ne, %57, %c0_i32_21 : i32
    scf.if %58 {
      %cst_22 = arith.constant 1.000000e+00 : f32
      %59 = vector.broadcast %cst_22 : f32 to vector<8x128xf32>
      %60 = arith.addf %59, %27 : vector<8x128xf32>
      %cst_23 = arith.constant 1.000000e+00 : f32
      %61 = vector.broadcast %cst_23 : f32 to vector<8x128xf32>
      %62 = arith.divf %61, %60 : vector<8x128xf32>
      %cst_24 = arith.constant 0.000000e+00 : f32
      %63 = vector.broadcast %cst_24 : f32 to vector<8x128xf32>
      %64 = arith.cmpf oge, %5, %63 : vector<8x128xf32>
      %65 = arith.mulf %27, %62 : vector<8x128xf32>
      %66 = arith.select %64, %62, %65 : vector<8x128xi1>, vector<8x128xf32>
      %c0_25 = arith.constant 0 : index
      %c1_26 = arith.constant 1 : index
      %c0_27 = arith.constant 0 : index
      %c0_28 = arith.constant 0 : index
      %67 = vector.load %arg2[%c0_25, %c1_26, %c0_27, %c0_28] : memref<1x13x8x128xf32, #tpu.memory_space<vmem>>, vector<1x1x8x128xf32>
      %68 = vector.shape_cast %67 : vector<1x1x8x128xf32> to vector<8x128xf32>
      %c0_29 = arith.constant 0 : index
      %c2 = arith.constant 2 : index
      %c0_30 = arith.constant 0 : index
      %c0_31 = arith.constant 0 : index
      %69 = vector.load %arg2[%c0_29, %c2, %c0_30, %c0_31] : memref<1x13x8x128xf32, #tpu.memory_space<vmem>>, vector<1x1x8x128xf32>
      %70 = vector.shape_cast %69 : vector<1x1x8x128xf32> to vector<8x128xf32>
      %c0_32 = arith.constant 0 : index
      %c3 = arith.constant 3 : index
      %c0_33 = arith.constant 0 : index
      %c0_34 = arith.constant 0 : index
      %71 = vector.load %arg2[%c0_32, %c3, %c0_33, %c0_34] : memref<1x13x8x128xf32, #tpu.memory_space<vmem>>, vector<1x1x8x128xf32>
      %72 = vector.shape_cast %71 : vector<1x1x8x128xf32> to vector<8x128xf32>
      %cst_35 = arith.constant 0.000000e+00 : f32
      %73 = vector.broadcast %cst_35 : f32 to vector<8x128xf32>
      %74 = arith.select %9, %72, %73 : vector<8x128xi1>, vector<8x128xf32>
      %c0_36 = arith.constant 0 : index
      %c4 = arith.constant 4 : index
      %c0_37 = arith.constant 0 : index
      %c0_38 = arith.constant 0 : index
      %75 = vector.load %arg2[%c0_36, %c4, %c0_37, %c0_38] : memref<1x13x8x128xf32, #tpu.memory_space<vmem>>, vector<1x1x8x128xf32>
      %76 = vector.shape_cast %75 : vector<1x1x8x128xf32> to vector<8x128xf32>
      %cst_39 = arith.constant 0.000000e+00 : f32
      %77 = vector.broadcast %cst_39 : f32 to vector<8x128xf32>
      %78 = arith.select %9, %76, %77 : vector<8x128xi1>, vector<8x128xf32>
      %c0_40 = arith.constant 0 : index
      %c1_41 = arith.constant 1 : index
      %c0_42 = arith.constant 0 : index
      %c0_43 = arith.constant 0 : index
      %79 = vector.load %arg3[%c0_40, %c1_41, %c0_42, %c0_43] : memref<1x6x8x128xf32, #tpu.memory_space<vmem>>, vector<1x1x8x128xf32>
      %80 = vector.shape_cast %79 : vector<1x1x8x128xf32> to vector<8x128xf32>
      %c0_44 = arith.constant 0 : index
      %c2_45 = arith.constant 2 : index
      %c0_46 = arith.constant 0 : index
      %c0_47 = arith.constant 0 : index
      %81 = vector.load %arg3[%c0_44, %c2_45, %c0_46, %c0_47] : memref<1x6x8x128xf32, #tpu.memory_space<vmem>>, vector<1x1x8x128xf32>
      %82 = vector.shape_cast %81 : vector<1x1x8x128xf32> to vector<8x128xf32>
      %c0_48 = arith.constant 0 : index
      %c3_49 = arith.constant 3 : index
      %c0_50 = arith.constant 0 : index
      %c0_51 = arith.constant 0 : index
      %83 = vector.load %arg3[%c0_48, %c3_49, %c0_50, %c0_51] : memref<1x6x8x128xf32, #tpu.memory_space<vmem>>, vector<1x1x8x128xf32>
      %84 = vector.shape_cast %83 : vector<1x1x8x128xf32> to vector<8x128xf32>
      %c0_52 = arith.constant 0 : index
      %c4_53 = arith.constant 4 : index
      %c0_54 = arith.constant 0 : index
      %c0_55 = arith.constant 0 : index
      %85 = vector.load %arg3[%c0_52, %c4_53, %c0_54, %c0_55] : memref<1x6x8x128xf32, #tpu.memory_space<vmem>>, vector<1x1x8x128xf32>
      %86 = vector.shape_cast %85 : vector<1x1x8x128xf32> to vector<8x128xf32>
      %c0_56 = arith.constant 0 : index
      %c5 = arith.constant 5 : index
      %c0_57 = arith.constant 0 : index
      %c0_58 = arith.constant 0 : index
      %87 = vector.load %arg3[%c0_56, %c5, %c0_57, %c0_58] : memref<1x6x8x128xf32, #tpu.memory_space<vmem>>, vector<1x1x8x128xf32>
      %88 = vector.shape_cast %87 : vector<1x1x8x128xf32> to vector<8x128xf32>
      %89 = arith.fptosi %88 : vector<8x128xf32> to vector<8x128xi32>
      %90 = math.absf %68 : vector<8x128xf32>
      %cst_59 = arith.constant 0.000000e+00 : f32
      %91 = vector.broadcast %cst_59 : f32 to vector<8x128xf32>
      %92 = arith.subf %91, %90 : vector<8x128xf32>
      %93 = math.exp %92 : vector<8x128xf32>
      %cst_60 = arith.constant 1.000000e+00 : f32
      %94 = vector.broadcast %cst_60 : f32 to vector<8x128xf32>
      %95 = arith.addf %94, %93 : vector<8x128xf32>
      %cst_61 = arith.constant 1.000000e+00 : f32
      %96 = vector.broadcast %cst_61 : f32 to vector<8x128xf32>
      %97 = arith.divf %96, %95 : vector<8x128xf32>
      %cst_62 = arith.constant 0.000000e+00 : f32
      %98 = vector.broadcast %cst_62 : f32 to vector<8x128xf32>
      %99 = arith.cmpf oge, %68, %98 : vector<8x128xf32>
      %100 = arith.mulf %93, %97 : vector<8x128xf32>
      %101 = arith.select %99, %97, %100 : vector<8x128xi1>, vector<8x128xf32>
      %102 = math.absf %70 : vector<8x128xf32>
      %cst_63 = arith.constant 0.000000e+00 : f32
      %103 = vector.broadcast %cst_63 : f32 to vector<8x128xf32>
      %104 = arith.subf %103, %102 : vector<8x128xf32>
      %105 = math.exp %104 : vector<8x128xf32>
      %cst_64 = arith.constant 1.000000e+00 : f32
      %106 = vector.broadcast %cst_64 : f32 to vector<8x128xf32>
      %107 = arith.addf %106, %105 : vector<8x128xf32>
      %cst_65 = arith.constant 1.000000e+00 : f32
      %108 = vector.broadcast %cst_65 : f32 to vector<8x128xf32>
      %109 = arith.divf %108, %107 : vector<8x128xf32>
      %cst_66 = arith.constant 0.000000e+00 : f32
      %110 = vector.broadcast %cst_66 : f32 to vector<8x128xf32>
      %111 = arith.cmpf oge, %70, %110 : vector<8x128xf32>
      %112 = arith.mulf %105, %109 : vector<8x128xf32>
      %113 = arith.select %111, %109, %112 : vector<8x128xi1>, vector<8x128xf32>
      %114 = math.exp %74 : vector<8x128xf32>
      %115 = vector.broadcast %1 : f32 to vector<8x128xf32>
      %116 = arith.mulf %114, %115 : vector<8x128xf32>
      %117 = math.exp %78 : vector<8x128xf32>
      %118 = vector.broadcast %3 : f32 to vector<8x128xf32>
      %119 = arith.mulf %117, %118 : vector<8x128xf32>
      %cst_67 = arith.constant 5.000000e-01 : f32
      %120 = vector.broadcast %cst_67 : f32 to vector<8x128xf32>
      %121 = arith.mulf %120, %116 : vector<8x128xf32>
      %122 = arith.addf %101, %121 : vector<8x128xf32>
      %cst_68 = arith.constant 5.000000e-01 : f32
      %123 = vector.broadcast %cst_68 : f32 to vector<8x128xf32>
      %124 = arith.mulf %123, %84 : vector<8x128xf32>
      %125 = arith.addf %80, %124 : vector<8x128xf32>
      %126 = arith.minimumf %122, %125 : vector<8x128xf32>
      %cst_69 = arith.constant 5.000000e-01 : f32
      %127 = vector.broadcast %cst_69 : f32 to vector<8x128xf32>
      %128 = arith.mulf %127, %116 : vector<8x128xf32>
      %129 = arith.subf %101, %128 : vector<8x128xf32>
      %cst_70 = arith.constant 5.000000e-01 : f32
      %130 = vector.broadcast %cst_70 : f32 to vector<8x128xf32>
      %131 = arith.mulf %130, %84 : vector<8x128xf32>
      %132 = arith.subf %80, %131 : vector<8x128xf32>
      %133 = arith.maximumf %129, %132 : vector<8x128xf32>
      %134 = arith.subf %126, %133 : vector<8x128xf32>
      %cst_71 = arith.constant 0.000000e+00 : f32
      %135 = vector.broadcast %cst_71 : f32 to vector<8x128xf32>
      %136 = arith.maximumf %134, %135 : vector<8x128xf32>
      %cst_72 = arith.constant 5.000000e-01 : f32
      %137 = vector.broadcast %cst_72 : f32 to vector<8x128xf32>
      %138 = arith.mulf %137, %119 : vector<8x128xf32>
      %139 = arith.addf %113, %138 : vector<8x128xf32>
      %cst_73 = arith.constant 5.000000e-01 : f32
      %140 = vector.broadcast %cst_73 : f32 to vector<8x128xf32>
      %141 = arith.mulf %140, %86 : vector<8x128xf32>
      %142 = arith.addf %82, %141 : vector<8x128xf32>
      %143 = arith.minimumf %139, %142 : vector<8x128xf32>
      %cst_74 = arith.constant 5.000000e-01 : f32
      %144 = vector.broadcast %cst_74 : f32 to vector<8x128xf32>
      %145 = arith.mulf %144, %119 : vector<8x128xf32>
      %146 = arith.subf %113, %145 : vector<8x128xf32>
      %cst_75 = arith.constant 5.000000e-01 : f32
      %147 = vector.broadcast %cst_75 : f32 to vector<8x128xf32>
      %148 = arith.mulf %147, %86 : vector<8x128xf32>
      %149 = arith.subf %82, %148 : vector<8x128xf32>
      %150 = arith.maximumf %146, %149 : vector<8x128xf32>
      %151 = arith.subf %143, %150 : vector<8x128xf32>
      %cst_76 = arith.constant 0.000000e+00 : f32
      %152 = vector.broadcast %cst_76 : f32 to vector<8x128xf32>
      %153 = arith.maximumf %151, %152 : vector<8x128xf32>
      %154 = arith.mulf %136, %153 : vector<8x128xf32>
      %155 = arith.mulf %116, %119 : vector<8x128xf32>
      %156 = math.absf %155 : vector<8x128xf32>
      %157 = arith.mulf %84, %86 : vector<8x128xf32>
      %158 = math.absf %157 : vector<8x128xf32>
      %159 = arith.addf %156, %158 : vector<8x128xf32>
      %160 = arith.subf %159, %154 : vector<8x128xf32>
      %cst_77 = arith.constant 9.99999997E-7 : f32
      %161 = vector.broadcast %cst_77 : f32 to vector<8x128xf32>
      %162 = arith.addf %160, %161 : vector<8x128xf32>
      %163 = tpu.reciprocal %162 {approx = true} : vector<8x128xf32> -> vector<8x128xf32>
      %164 = arith.mulf %154, %163 : vector<8x128xf32>
      %165 = arith.subf %164, %66 : vector<8x128xf32>
      %166 = arith.mulf %165, %165 : vector<8x128xf32>
      %167 = arith.mulf %166, %13 : vector<8x128xf32>
      %168 = vector.shape_cast %167 : vector<8x128xf32> to vector<1x8x128xf32>
      %cst_78 = arith.constant dense<0.000000e+00> : vector<1xf32>
      %169 = vector.multi_reduction <add>, %168, %cst_78 [1, 2] : vector<1x8x128xf32> to vector<1xf32>
      %170 = vector.shape_cast %169 : vector<1xf32> to vector<1x1x1xf32>
      %171 = vector.extract %170[0, 0, 0] : f32 from vector<1x1x1xf32>
      %cst_79 = arith.constant 1.000000e+00 : f32
      %172 = arith.divf %cst_79, %1 : f32
      %cst_80 = arith.constant 1.000000e+00 : f32
      %173 = arith.divf %cst_80, %3 : f32
      %174 = arith.subf %101, %80 : vector<8x128xf32>
      %175 = arith.subf %113, %82 : vector<8x128xf32>
      %176 = vector.broadcast %172 : f32 to vector<8x128xf32>
      %177 = arith.mulf %84, %176 : vector<8x128xf32>
      %cst_81 = arith.constant 1.000000e-16 : f32
      %178 = vector.broadcast %cst_81 : f32 to vector<8x128xf32>
      %179 = arith.addf %178, %177 : vector<8x128xf32>
      %180 = math.log %179 : vector<8x128xf32>
      %181 = arith.subf %74, %180 : vector<8x128xf32>
      %182 = vector.broadcast %173 : f32 to vector<8x128xf32>
      %183 = arith.mulf %86, %182 : vector<8x128xf32>
      %cst_82 = arith.constant 1.000000e-16 : f32
      %184 = vector.broadcast %cst_82 : f32 to vector<8x128xf32>
      %185 = arith.addf %184, %183 : vector<8x128xf32>
      %186 = math.log %185 : vector<8x128xf32>
      %187 = arith.subf %78, %186 : vector<8x128xf32>
      %188 = arith.mulf %174, %174 : vector<8x128xf32>
      %189 = arith.mulf %175, %175 : vector<8x128xf32>
      %190 = arith.addf %188, %189 : vector<8x128xf32>
      %191 = arith.mulf %181, %181 : vector<8x128xf32>
      %192 = arith.addf %190, %191 : vector<8x128xf32>
      %193 = arith.mulf %187, %187 : vector<8x128xf32>
      %194 = arith.addf %192, %193 : vector<8x128xf32>
      %195 = arith.mulf %194, %13 : vector<8x128xf32>
      %196 = vector.shape_cast %195 : vector<8x128xf32> to vector<1x8x128xf32>
      %cst_83 = arith.constant dense<0.000000e+00> : vector<1xf32>
      %197 = vector.multi_reduction <add>, %196, %cst_83 [1, 2] : vector<1x8x128xf32> to vector<1xf32>
      %198 = vector.shape_cast %197 : vector<1xf32> to vector<1x1x1xf32>
      %199 = vector.extract %198[0, 0, 0] : f32 from vector<1x1x1xf32>
      %c0_84 = arith.constant 0 : index
      %c5_85 = arith.constant 5 : index
      %c0_86 = arith.constant 0 : index
      %c0_87 = arith.constant 0 : index
      %200 = vector.load %arg2[%c0_84, %c5_85, %c0_86, %c0_87] : memref<1x13x8x128xf32, #tpu.memory_space<vmem>>, vector<1x1x8x128xf32>
      %201 = vector.shape_cast %200 : vector<1x1x8x128xf32> to vector<8x128xf32>
      %c0_88 = arith.constant 0 : index
      %c6 = arith.constant 6 : index
      %c0_89 = arith.constant 0 : index
      %c0_90 = arith.constant 0 : index
      %202 = vector.load %arg2[%c0_88, %c6, %c0_89, %c0_90] : memref<1x13x8x128xf32, #tpu.memory_space<vmem>>, vector<1x1x8x128xf32>
      %203 = vector.shape_cast %202 : vector<1x1x8x128xf32> to vector<8x128xf32>
      %204 = arith.maximumf %201, %203 : vector<8x128xf32>
      %c0_91 = arith.constant 0 : index
      %c7 = arith.constant 7 : index
      %c0_92 = arith.constant 0 : index
      %c0_93 = arith.constant 0 : index
      %205 = vector.load %arg2[%c0_91, %c7, %c0_92, %c0_93] : memref<1x13x8x128xf32, #tpu.memory_space<vmem>>, vector<1x1x8x128xf32>
      %206 = vector.shape_cast %205 : vector<1x1x8x128xf32> to vector<8x128xf32>
      %207 = arith.maximumf %204, %206 : vector<8x128xf32>
      %c0_94 = arith.constant 0 : index
      %c8 = arith.constant 8 : index
      %c0_95 = arith.constant 0 : index
      %c0_96 = arith.constant 0 : index
      %208 = vector.load %arg2[%c0_94, %c8, %c0_95, %c0_96] : memref<1x13x8x128xf32, #tpu.memory_space<vmem>>, vector<1x1x8x128xf32>
      %209 = vector.shape_cast %208 : vector<1x1x8x128xf32> to vector<8x128xf32>
      %210 = arith.maximumf %207, %209 : vector<8x128xf32>
      %c0_97 = arith.constant 0 : index
      %c9 = arith.constant 9 : index
      %c0_98 = arith.constant 0 : index
      %c0_99 = arith.constant 0 : index
      %211 = vector.load %arg2[%c0_97, %c9, %c0_98, %c0_99] : memref<1x13x8x128xf32, #tpu.memory_space<vmem>>, vector<1x1x8x128xf32>
      %212 = vector.shape_cast %211 : vector<1x1x8x128xf32> to vector<8x128xf32>
      %213 = arith.maximumf %210, %212 : vector<8x128xf32>
      %c0_100 = arith.constant 0 : index
      %c10 = arith.constant 10 : index
      %c0_101 = arith.constant 0 : index
      %c0_102 = arith.constant 0 : index
      %214 = vector.load %arg2[%c0_100, %c10, %c0_101, %c0_102] : memref<1x13x8x128xf32, #tpu.memory_space<vmem>>, vector<1x1x8x128xf32>
      %215 = vector.shape_cast %214 : vector<1x1x8x128xf32> to vector<8x128xf32>
      %216 = arith.maximumf %213, %215 : vector<8x128xf32>
      %c0_103 = arith.constant 0 : index
      %c11 = arith.constant 11 : index
      %c0_104 = arith.constant 0 : index
      %c0_105 = arith.constant 0 : index
      %217 = vector.load %arg2[%c0_103, %c11, %c0_104, %c0_105] : memref<1x13x8x128xf32, #tpu.memory_space<vmem>>, vector<1x1x8x128xf32>
      %218 = vector.shape_cast %217 : vector<1x1x8x128xf32> to vector<8x128xf32>
      %219 = arith.maximumf %216, %218 : vector<8x128xf32>
      %c0_106 = arith.constant 0 : index
      %c12 = arith.constant 12 : index
      %c0_107 = arith.constant 0 : index
      %c0_108 = arith.constant 0 : index
      %220 = vector.load %arg2[%c0_106, %c12, %c0_107, %c0_108] : memref<1x13x8x128xf32, #tpu.memory_space<vmem>>, vector<1x1x8x128xf32>
      %221 = vector.shape_cast %220 : vector<1x1x8x128xf32> to vector<8x128xf32>
      %222 = arith.maximumf %219, %221 : vector<8x128xf32>
      %cst_109 = arith.constant 0.000000e+00 : f32
      %223 = vector.broadcast %cst_109 : f32 to vector<8x128xf32>
      %cst_110 = arith.constant 0.000000e+00 : f32
      %224 = vector.broadcast %cst_110 : f32 to vector<8x128xf32>
      %c0_111 = arith.constant 0 : index
      %c5_112 = arith.constant 5 : index
      %c0_113 = arith.constant 0 : index
      %c0_114 = arith.constant 0 : index
      %225 = vector.load %arg2[%c0_111, %c5_112, %c0_113, %c0_114] : memref<1x13x8x128xf32, #tpu.memory_space<vmem>>, vector<1x1x8x128xf32>
      %226 = vector.shape_cast %225 : vector<1x1x8x128xf32> to vector<8x128xf32>
      %227 = arith.subf %226, %222 : vector<8x128xf32>
      %228 = math.exp %227 : vector<8x128xf32>
      %229 = arith.addf %223, %228 : vector<8x128xf32>
      %c0_i32_115 = arith.constant 0 : i32
      %230 = vector.broadcast %c0_i32_115 : i32 to vector<8x128xi32>
      %231 = arith.cmpi eq, %89, %230 : vector<8x128xi32>
      %232 = arith.select %231, %226, %224 : vector<8x128xi1>, vector<8x128xf32>
      %c0_116 = arith.constant 0 : index
      %c6_117 = arith.constant 6 : index
      %c0_118 = arith.constant 0 : index
      %c0_119 = arith.constant 0 : index
      %233 = vector.load %arg2[%c0_116, %c6_117, %c0_118, %c0_119] : memref<1x13x8x128xf32, #tpu.memory_space<vmem>>, vector<1x1x8x128xf32>
      %234 = vector.shape_cast %233 : vector<1x1x8x128xf32> to vector<8x128xf32>
      %235 = arith.subf %234, %222 : vector<8x128xf32>
      %236 = math.exp %235 : vector<8x128xf32>
      %237 = arith.addf %229, %236 : vector<8x128xf32>
      %c1_i32_120 = arith.constant 1 : i32
      %238 = vector.broadcast %c1_i32_120 : i32 to vector<8x128xi32>
      %239 = arith.cmpi eq, %89, %238 : vector<8x128xi32>
      %240 = arith.select %239, %234, %232 : vector<8x128xi1>, vector<8x128xf32>
      %c0_121 = arith.constant 0 : index
      %c7_122 = arith.constant 7 : index
      %c0_123 = arith.constant 0 : index
      %c0_124 = arith.constant 0 : index
      %241 = vector.load %arg2[%c0_121, %c7_122, %c0_123, %c0_124] : memref<1x13x8x128xf32, #tpu.memory_space<vmem>>, vector<1x1x8x128xf32>
      %242 = vector.shape_cast %241 : vector<1x1x8x128xf32> to vector<8x128xf32>
      %243 = arith.subf %242, %222 : vector<8x128xf32>
      %244 = math.exp %243 : vector<8x128xf32>
      %245 = arith.addf %237, %244 : vector<8x128xf32>
      %c2_i32 = arith.constant 2 : i32
      %246 = vector.broadcast %c2_i32 : i32 to vector<8x128xi32>
      %247 = arith.cmpi eq, %89, %246 : vector<8x128xi32>
      %248 = arith.select %247, %242, %240 : vector<8x128xi1>, vector<8x128xf32>
      %c0_125 = arith.constant 0 : index
      %c8_126 = arith.constant 8 : index
      %c0_127 = arith.constant 0 : index
      %c0_128 = arith.constant 0 : index
      %249 = vector.load %arg2[%c0_125, %c8_126, %c0_127, %c0_128] : memref<1x13x8x128xf32, #tpu.memory_space<vmem>>, vector<1x1x8x128xf32>
      %250 = vector.shape_cast %249 : vector<1x1x8x128xf32> to vector<8x128xf32>
      %251 = arith.subf %250, %222 : vector<8x128xf32>
      %252 = math.exp %251 : vector<8x128xf32>
      %253 = arith.addf %245, %252 : vector<8x128xf32>
      %c3_i32_129 = arith.constant 3 : i32
      %254 = vector.broadcast %c3_i32_129 : i32 to vector<8x128xi32>
      %255 = arith.cmpi eq, %89, %254 : vector<8x128xi32>
      %256 = arith.select %255, %250, %248 : vector<8x128xi1>, vector<8x128xf32>
      %c0_130 = arith.constant 0 : index
      %c9_131 = arith.constant 9 : index
      %c0_132 = arith.constant 0 : index
      %c0_133 = arith.constant 0 : index
      %257 = vector.load %arg2[%c0_130, %c9_131, %c0_132, %c0_133] : memref<1x13x8x128xf32, #tpu.memory_space<vmem>>, vector<1x1x8x128xf32>
      %258 = vector.shape_cast %257 : vector<1x1x8x128xf32> to vector<8x128xf32>
      %259 = arith.subf %258, %222 : vector<8x128xf32>
      %260 = math.exp %259 : vector<8x128xf32>
      %261 = arith.addf %253, %260 : vector<8x128xf32>
      %c4_i32 = arith.constant 4 : i32
      %262 = vector.broadcast %c4_i32 : i32 to vector<8x128xi32>
      %263 = arith.cmpi eq, %89, %262 : vector<8x128xi32>
      %264 = arith.select %263, %258, %256 : vector<8x128xi1>, vector<8x128xf32>
      %c0_134 = arith.constant 0 : index
      %c10_135 = arith.constant 10 : index
      %c0_136 = arith.constant 0 : index
      %c0_137 = arith.constant 0 : index
      %265 = vector.load %arg2[%c0_134, %c10_135, %c0_136, %c0_137] : memref<1x13x8x128xf32, #tpu.memory_space<vmem>>, vector<1x1x8x128xf32>
      %266 = vector.shape_cast %265 : vector<1x1x8x128xf32> to vector<8x128xf32>
      %267 = arith.subf %266, %222 : vector<8x128xf32>
      %268 = math.exp %267 : vector<8x128xf32>
      %269 = arith.addf %261, %268 : vector<8x128xf32>
      %c5_i32 = arith.constant 5 : i32
      %270 = vector.broadcast %c5_i32 : i32 to vector<8x128xi32>
      %271 = arith.cmpi eq, %89, %270 : vector<8x128xi32>
      %272 = arith.select %271, %266, %264 : vector<8x128xi1>, vector<8x128xf32>
      %c0_138 = arith.constant 0 : index
      %c11_139 = arith.constant 11 : index
      %c0_140 = arith.constant 0 : index
      %c0_141 = arith.constant 0 : index
      %273 = vector.load %arg2[%c0_138, %c11_139, %c0_140, %c0_141] : memref<1x13x8x128xf32, #tpu.memory_space<vmem>>, vector<1x1x8x128xf32>
      %274 = vector.shape_cast %273 : vector<1x1x8x128xf32> to vector<8x128xf32>
      %275 = arith.subf %274, %222 : vector<8x128xf32>
      %276 = math.exp %275 : vector<8x128xf32>
      %277 = arith.addf %269, %276 : vector<8x128xf32>
      %c6_i32 = arith.constant 6 : i32
      %278 = vector.broadcast %c6_i32 : i32 to vector<8x128xi32>
      %279 = arith.cmpi eq, %89, %278 : vector<8x128xi32>
      %280 = arith.select %279, %274, %272 : vector<8x128xi1>, vector<8x128xf32>
      %c0_142 = arith.constant 0 : index
      %c12_143 = arith.constant 12 : index
      %c0_144 = arith.constant 0 : index
      %c0_145 = arith.constant 0 : index
      %281 = vector.load %arg2[%c0_142, %c12_143, %c0_144, %c0_145] : memref<1x13x8x128xf32, #tpu.memory_space<vmem>>, vector<1x1x8x128xf32>
      %282 = vector.shape_cast %281 : vector<1x1x8x128xf32> to vector<8x128xf32>
      %283 = arith.subf %282, %222 : vector<8x128xf32>
      %284 = math.exp %283 : vector<8x128xf32>
      %285 = arith.addf %277, %284 : vector<8x128xf32>
      %c7_i32 = arith.constant 7 : i32
      %286 = vector.broadcast %c7_i32 : i32 to vector<8x128xi32>
      %287 = arith.cmpi eq, %89, %286 : vector<8x128xi32>
      %288 = arith.select %287, %282, %280 : vector<8x128xi1>, vector<8x128xf32>
      %289 = math.log %285 : vector<8x128xf32>
      %290 = arith.addf %222, %289 : vector<8x128xf32>
      %291 = arith.subf %290, %288 : vector<8x128xf32>
      %292 = arith.mulf %291, %13 : vector<8x128xf32>
      %293 = vector.shape_cast %292 : vector<8x128xf32> to vector<1x8x128xf32>
      %cst_146 = arith.constant dense<0.000000e+00> : vector<1xf32>
      %294 = vector.multi_reduction <add>, %293, %cst_146 [1, 2] : vector<1x8x128xf32> to vector<1xf32>
      %295 = vector.shape_cast %294 : vector<1xf32> to vector<1x1x1xf32>
      %296 = vector.extract %295[0, 0, 0] : f32 from vector<1x1x1xf32>
      %c2_i32_147 = arith.constant 2 : i32
      %297 = vector.broadcast %c2_i32_147 : i32 to vector<8x128xi32>
      %298 = arith.cmpi eq, %39, %297 : vector<8x128xi32>
      %c4_i32_148 = arith.constant 4 : i32
      %299 = vector.broadcast %c4_i32_148 : i32 to vector<8x128xi32>
      %300 = arith.cmpi eq, %39, %299 : vector<8x128xi32>
      %c5_i32_149 = arith.constant 5 : i32
      %301 = vector.broadcast %c5_i32_149 : i32 to vector<8x128xi32>
      %302 = arith.cmpi eq, %39, %301 : vector<8x128xi32>
      %cst_150 = arith.constant 0.000000e+00 : f32
      %303 = vector.broadcast %296 : f32 to vector<8x128xf32>
      %304 = vector.broadcast %cst_150 : f32 to vector<8x128xf32>
      %305 = arith.select %302, %303, %304 : vector<8x128xi1>, vector<8x128xf32>
      %306 = vector.broadcast %199 : f32 to vector<8x128xf32>
      %307 = arith.select %300, %306, %305 : vector<8x128xi1>, vector<8x128xf32>
      %308 = vector.broadcast %171 : f32 to vector<8x128xf32>
      %309 = arith.select %298, %308, %307 : vector<8x128xi1>, vector<8x128xf32>
      %c0_151 = arith.constant 0 : index
      %c0_152 = arith.constant 0 : index
      %c0_153 = arith.constant 0 : index
      %c0_154 = arith.constant 0 : index
      %310 = vector.load %arg5[%c0_151, %c0_152, %c0_153, %c0_154] : memref<1x1x8x128xf32, #tpu.memory_space<vmem>>, vector<1x1x8x128xf32>
      %311 = vector.shape_cast %310 : vector<1x1x8x128xf32> to vector<8x128xf32>
      %312 = arith.addf %311, %309 : vector<8x128xf32>
      %c0_155 = arith.constant 0 : index
      %c0_156 = arith.constant 0 : index
      %c0_157 = arith.constant 0 : index
      %c0_158 = arith.constant 0 : index
      %313 = vector.load %arg5[%c0_155, %c0_156, %c0_157, %c0_158] : memref<1x1x8x128xf32, #tpu.memory_space<vmem>>, vector<1x1x8x128xf32>
      %314 = vector.shape_cast %313 : vector<1x1x8x128xf32> to vector<8x128xf32>
      %315 = vector.shape_cast %312 : vector<8x128xf32> to vector<1x1x8x128xf32>
      tpu.vector_store %arg5[%c0_155, %c0_156, %c0_157, %c0_158], %315 {strides = array<i32>} : memref<1x1x8x128xf32, #tpu.memory_space<vmem>>, vector<1x1x8x128xf32>,
    } else {
    }
    return
  }
  func.func @transform_0(%arg0: i32, %arg1: i32) -> (i32, i32, i32, i32) {
    %c0_i32 = arith.constant 0 : i32
    %c0_i32_0 = arith.constant 0 : i32
    %c0_i32_1 = arith.constant 0 : i32
    return %arg0, %c0_i32, %arg1, %c0_i32_0 : i32, i32, i32, i32
  }
  func.func @transform_1(%arg0: i32, %arg1: i32) -> (i32, i32, i32, i32) {
    %c0_i32 = arith.constant 0 : i32
    %c0_i32_0 = arith.constant 0 : i32
    %c0_i32_1 = arith.constant 0 : i32
    return %arg0, %c0_i32, %arg1, %c0_i32_0 : i32, i32, i32, i32
  }
  func.func @transform_2(%arg0: i32, %arg1: i32) -> (i32, i32) {
    %c0_i32 = arith.constant 0 : i32
    %c0_i32_0 = arith.constant 0 : i32
    %c0_i32_1 = arith.constant 0 : i32
    return %c0_i32, %c0_i32_0 : i32, i32
  }
  func.func @transform_3(%arg0: i32, %arg1: i32) -> (i32, i32, i32, i32) {
    %c0_i32 = arith.constant 0 : i32
    %c0_i32_0 = arith.constant 0 : i32
    %c0_i32_1 = arith.constant 0 : i32
    return %arg0, %arg1, %c0_i32, %c0_i32_0 : i32, i32, i32, i32
  }
}

</mosaic_0001>

<bundles_post_ra>
// kernel: tpu_custom_call.1
= control target key start
LH: loop header
LB: loop body
LE: loop exit
PB: predicated region body
PF: predicated region fallthrough
CT: control target
= control target key end

     0   :  { %s1398_s0 = inlined_call_operand.hbm [shape: f32[3,13,8,128], index: 0, kind: input, shape index: {}]   ;;  %s1399_s1 = inlined_call_operand.hbm [shape: f32[3,6,8,128], index: 1, kind: input, shape index: {}]   ;;  %s1400_s2 = inlined_call_operand.vmem [shape: f32[3,2], index: 2, kind: input, shape index: {}]   ;;  %s1401_s3 = inlined_call_operand.hbm [shape: f32[3,1,8,128], index: 3, kind: output, shape index: {}]  }
   0x1   :  { %1404 = sst [smem:[#allocation16_spill]] %s1398_s0 }
   0x2   :  { %1405 = sst [smem:[#allocation17_spill]] %s1400_s2 }
   0x3   :  { %8 = vsyncpa [#allocation3], 0 }
   0x4   :  { %10 = vsyncpa [#allocation3 + $0x1], 0 }
   0x5   :  { %11 = vsyncpa [#allocation7], 0 }
   0x6   :  { %13 = vsyncpa [#allocation7 + $0x1], 0 }
   0x7   :  { %14 = vsyncpa [#allocation5], 0 }
   0x8   :  { %15 = vsyncpa [#allocation4], 0 }
   0x9   :  { %17 = vsyncpa [#allocation4 + $0x1], 0  ;;  %s1064_s12 = smov 0   ;;  %s1066_s13 = smov 0  }
   0xa   :  { %s1068_s14 = smov 0   ;;  %s1070_s15 = smov 0  }
   0xb   :  { %s1072_s16 = smov 0   ;;  %s1074_s17 = smov 0  }
   0xc LB: > { %s691_s18 = sadd.s32 4294967295, %s1035_s17   ;;  %s692_s19 = sadd.s32 4294967294, %s1035_s17   ;;  %s1035_s17 = sphi %s1074_s17, %s23_s17   ;;  %s1031_s16 = sphi %s1072_s16, %s1426_s16   ;;  %s1027_s15 = sphi %s1070_s15, %s1425_s15   ;;  %s1023_s14 = sphi %s1068_s14, %s1424_s14   ;;  %s1019_s13 = sphi %s1066_s13, %s1423_s13   ;;  %s1015_s12 = sphi %s1064_s12, %s1422_s12  }
   0xd   : > { %s44_s20 = sadd.s32 1, %s1023_s14  ;;  %p51_p0 = scmp.ne.s32.totalorder %s1023_s14, %s1019_s13 }
   0xe   : > { %p52_p1 = scmp.eq.s32.totalorder %s1035_s17, 0  ;;  %p57_p2 = scmp.ne.s32.totalorder %s1019_s13, %s1015_s12 }
   0xf   : > { %p1102_p3 = scmp.eq.s32.totalorder %s691_s18, 0  ;;  %p132_p4 = scmp.eq.s32.totalorder %s691_s18, 2 }
  0x10   : > { %p53_p5 = por %p52_p1, %p51_p0  ;;  %p138_p6 = scmp.eq.s32.totalorder %s692_s19, 2 }
  0x11   : > { %p1108_p7 = por %p1102_p3, %p57_p2  ;;  %p1112_p8 = por %p132_p4, %p51_p0 }
  0x12   : > { %p1116_p9 = por %p138_p6, %p57_p2  ;;  %p693_p10 = scmp.ge.s32.totalorder %s1035_s17, 1 }
  0x13   : > { %s1408_s23 = scalar_select %p1112_p8, 1, 0 }
  0x14   : > { %s1409_s24 = scalar_select %p1116_p9, 1, 0 }
  0x15   : > { %p145_p11 = scmp.lt.s32.totalorder %s1035_s17, 4  ;;  %s1410_s2 = sld [smem:[#allocation17_spill]] }
  0x16   : > { %p775_p13 = scmp.lt.s32.totalorder %s1035_s17, 3  ;;  %s35_s4 = sadd.s32 1, %s1031_s16 }
  0x17   : > { %p1125_p12 = pnand %p693_p10, %p145_p11  ;;  %p1143_p4 = scmp.ge.s32.totalorder %s35_s4, 3 }
  0x18   : > { %p1132_p1 = pnand %p775_p13, %p53_p5  ;;  %s1148_s6 = sand.u32 1, %s1023_s14  }
  0x19   : > { %p759_p0 = pneg %p1125_p12 }
  0x1b   : > { %s158_s27 = sshll.u32 %s1410_s2, 4  ;;  %p1138_p2 = pnand %p759_p0, %p1102_p3  ;;  %s159_s27 = int_to_ptr.vmem [resolvable:$true] %s158_s27 }
  0x1c   : > { %s876_s7 = scalar_lea.vmem %s159_s27, 64  ;;  %p884_p13 = scmp.lt.s32.totalorder %s159_s27, %s159_s27 }
  0x1d   : > { %p877_p6 = scmp.ne.s32.totalorder %s159_s27, %s876_s7  ;;  %p878_p5 = pneg %p1138_p2 }
  0x1e   : > { %p885_p9 = scmp.lt.s32.totalorder %s876_s7, %s876_s7 }
  0x1f   : > { %p879_p10 = pnand %p878_p5, %p877_p6 }
  0x20   : > { %p886_p0 = por %p885_p9, %p884_p13 }
  0x21   : > { %p880_p11 = pneg %p879_p10 }
  0x23   : > { %p887_p8 = pnand %p886_p0, %p880_p11 }
  0x25   : > { %890 = shalt.err (!%p887_p8)
}
  0x26   : > { %s1037_s8 = smov [#allocation8]   ;;  %s1428_s4 = smov (%p1143_p4, %s35_s4), 0 }
  0x27   : > { %762 = dma.vmem_to_smem (!%p1138_p2), %s159_s27, 64, %s1037_s8, [#allocation5]  }
  0x28   : > { %1415 = sst [smem:[#allocation14_spill]] %s1428_s4  ;;  %s725_s9 = smul.u32 104, %s1148_s6 }
  0x29   : > { %s39_s10 = ssub.s32 %s1031_s16, %s1428_s4  ;;  %s726_s11 = smul.u32 1664, %s1031_s16 }
  0x2a   : > { %p42_p8 = scmp.eq.s32.totalorder %s39_s10, 0  ;;  %s1416_s0 = sld [smem:[#allocation16_spill]] }
  0x2b   : > { %s173_s26 = scalar_lea.vmem [#allocation2], %s725_s9  ;;  %s170_s2 = scalar_lea.sflag [#allocation3], %s1148_s6 }
  0x2c   : > { %s181_s30 = sshll.u32 %s173_s26, 4  ;;  %p893_p9 = pneg %p1132_p1  ;;  %s182_s30 = int_to_ptr.vmem [resolvable:$true] %s181_s30 }
  0x2d   : > { %s1168_s7 = scalar_select %p42_p8, %s1023_s14, %s44_s20  }
  0x2e   : > { %s904_s27 = scalar_lea.vmem %s182_s30, 1664  ;;  %s1038_s5 = smov [#allocation2]  }
  0x2f   : > { %1417 = sst [smem:[#allocation15_spill]] %s1168_s7  ;;  %p905_p2 = scmp.ne.s32.totalorder %s182_s30, %s904_s27 }
  0x30   : > { %s180_s25 = scalar_lea.hbm %s1416_s0, %s726_s11  ;;  %s909_s8 = sshll.u32 %s1038_s5, 4  ;;  %s910_s8 = int_to_ptr.vmem [resolvable:$false] %s909_s8 }
  0x31   : > { %p907_p4 = pnand %p905_p2, %p893_p9  ;;  %s911_s10 = scalar_lea.vmem %s910_s8, 3328 }
  0x32   : > { %p912_p5 = scmp.lt.s32.totalorder %s182_s30, %s910_s8  ;;  %p913_p10 = scmp.lt.s32.totalorder %s911_s10, %s904_s27 }
  0x33   : > { %p908_p6 = pneg %p907_p4 }
  0x34   : > { %p914_p11 = por %p913_p10, %p912_p5 }
  0x36   : > { %p915_p13 = pnand %p914_p11, %p908_p6 }
  0x38   : > { %918 = shalt.err (!%p915_p13)
}
  0x39   : > { %s1039_s20 = smov 128   ;;  %s1040_s9 = smov 8  }
  0x3a   : > { %766 = dma.hbm_to_vmem [thread:$0]  (!%p1132_p1), %s180_s25, 1664, %s182_s30, %s170_s2, %s1039_s20, %s1039_s20, %s1040_s9  }
  0x3b   : > { %s727_s11 = smul.u32 48, %s1148_s6  ;;  %s192_s10 = scalar_lea.sflag [#allocation7], %s1148_s6 }
  0x3c   : > { %s728_s18 = smul.u32 768, %s1031_s16  ;;  %s1041_s4 = smov [#allocation6]  }
  0x3d   : > { %s195_s8 = scalar_lea.vmem [#allocation6], %s727_s11  ;;  %s937_s7 = sshll.u32 %s1041_s4, 4  ;;  %s938_s7 = int_to_ptr.vmem [resolvable:$false] %s937_s7 }
  0x3e   : > { %s202_s5 = scalar_lea.hbm %s1399_s1, %s728_s18  ;;  %s203_s27 = sshll.u32 %s195_s8, 4  ;;  %s204_s27 = int_to_ptr.vmem [resolvable:$true] %s203_s27 }
  0x3f   : > { %s932_s0 = scalar_lea.vmem %s204_s27, 768  ;;  %s939_s2 = scalar_lea.vmem %s938_s7, 1536 }
  0x40   : > { %p933_p0 = scmp.ne.s32.totalorder %s204_s27, %s932_s0  ;;  %p940_p4 = scmp.lt.s32.totalorder %s204_s27, %s938_s7 }
  0x41   : > { %p941_p6 = scmp.lt.s32.totalorder %s939_s2, %s932_s0 }
  0x42   : > { %p935_p8 = pnand %p933_p0, %p893_p9 }
  0x43   : > { %p942_p5 = por %p941_p6, %p940_p4 }
  0x44   : > { %p936_p2 = pneg %p935_p8 }
  0x46   : > { %p943_p10 = pnand %p942_p5, %p936_p2 }
  0x48   : > { %946 = shalt.err (!%p943_p10)
}
  0x49   : > { %769 = dma.hbm_to_vmem [thread:$0]  (!%p1132_p1), %s202_s5, 768, %s204_s27, %s192_s10, %s1039_s20, %s1039_s20, %s1040_s9  }
  0x4a   : > { %215 = sbr.rel (%p1125_p12) target bundleno = 833 (0x341), region = 32  ;;  %s1192_s6 = sand.u32 (!%p1125_p12), 1, %s1019_s13  }
  0x4b   : > { %s729_s4 = smul.u32 (!%p1125_p12), 104, %s1192_s6  ;;  %s218_s25 = scalar_lea.sflag (!%p1125_p12), [#allocation3], %s1192_s6 }
  0x4d   : > { %s1196_s30 = scalar_lea.vmem (!%p1125_p12), [#allocation2], %s729_s4 }
  0x4f   : > { %998 = dma.done.wait (%p1108_p7), %s218_s25, 1664  }
  0x50   : > { %1000 = vsyncadd (%p1108_p7), %s218_s25, 4294965632  ;;  %s730_s0 = smul.u32 48, %s1192_s6  ;;  %s227_s28 = scalar_lea.sflag [#allocation7], %s1192_s6 }
  0x52   : > { %s1204_s29 = scalar_lea.vmem [#allocation6], %s730_s0 }
  0x53   : > { %1002 = dma.done.wait (%p1108_p7), %s227_s28, 768  }
  0x54   : > { %1004 = vsyncadd (%p1108_p7), %s227_s28, 4294966528 }
  0x55   : > { %1006 = dma.done.wait (%p1102_p3), [#allocation5], 64  }
  0x56   : > { %1008 = vsyncadd (%p1102_p3), [#allocation5], 4294967232 }
  0x57   : > { %239 = sfence }
  0x58   : > { %v1215_v0 = vld [vmem:[%s1204_s29] sm:$0xff]  ;;  %v1218_v1 = vld [vmem:[%s1196_s30] sm:$0xff]  ;;  %v1042_v3 = vmov 0.0   ;;  %s1236_s21 = sshll.u32 %s1027_s15, 7  ;;  %v312_v36 = vlaneseq  ;;  %s700_s11 = sshll.u32 %s1192_s6, 3 }
  0x59   : > { %vm269_vm0 = vcmp.eq.f32.partialorder %v1215_v0, 1.0  ;;  %vm270_vm1 = vcmp.eq.f32.partialorder %v1215_v0, 0.0  ;;  %v293_v2 = vand.u32 2147483647, %v1218_v1  ;;  %v297_v10 = vmax.f32 %v1218_v1, 0.0  ;;  %s1239_s22 = sld [smem:[#allocation8 + %s1236_s21]] }
  0x5a   : > { %v1225_v4 = vsel %vm269_vm0, 1.0, %v1042_v3  ;;  %v703_v6 = vsel %vm270_vm1, 1.0, %v1042_v3  ;;  %s265_s7 = sadd.s32 1, %s1236_s21  ;;  %v1244_v37 = vshrl.u32 %v312_v36, 7  ;;  %s1250_s19 = scalar_lea.vmem [#allocation9], %s700_s11 }
  0x5b   : > { %275 = vadd.xlane.f32.xlu0 %v1225_v4  ;;  %v294_v5 = vsub.f32 0.0, %v293_v2  ;;  %s1242_s20 = sld [smem:[#allocation8 + %s265_s7]] }
  0x5c   : > { %vm316_vm2 = vcmp.eq.s32.totalorder %v1244_v37, 3  ;;  %vm315_vm3 = vcmp.eq.s32.totalorder %v1244_v37, 1  ;;  %vm314_vm4 = vcmp.eq.s32.totalorder %v1244_v37, 0 }
  0x5d   : > { %v295_v7 = vmul.f32 1.442695, %v294_v5 }
  0x5f   : > { %284 = vadd.xlane.f32.xlu0 %v703_v6  ;;  %830 = vpow2.f32 %v295_v7 }
  0x6c   : > { %v1228_v8 = vpop.eup %830 }
  0x6d   : > { %v1231_v9 = vadd.f32 1.0, %v1228_v8 }
  0x6f   : > { %832 = vlog2.f32 %v1231_v9 }
  0x7c   : > { %v833_v11 = vpop.eup %832 }
  0x7d   : > { %v300_v12 = vmul.f32 0.6931472, %v833_v11 }
  0x7f   : > { %v301_v13 = vadd.f32 %v300_v12, %v297_v10 }
  0x81   : > { %v302_v14 = vmul.f32 %v703_v6, %v301_v13 }
  0x83   : > { %303 = vadd.xlane.f32.xlu1 %v302_v14 }
  0xe4   : > { %v276_v15 = vpop.xlane.xlu0 %275 }
  0xe5   : > { %v277_v16 = vrot.slane %v276_v15, 4 }
  0xe7   : > { %v278_v17 = vadd.f32 %v277_v16, %v276_v15 }
  0xe8   : > { %v285_v18 = vpop.xlane.xlu0 %284 }
  0xe9   : > { %v279_v19 = vrot.slane %v278_v17, 2  ;;  %v286_v20 = vrot.slane %v285_v18, 4 }
  0xeb   : > { %v287_v21 = vadd.f32 %v286_v20, %v285_v18  ;;  %v280_v22 = vadd.f32 %v279_v19, %v278_v17 }
  0xed   : > { %v288_v23 = vrot.slane %v287_v21, 2  ;;  %v281_v24 = vrot.slane %v280_v22, 1 }
  0xef   : > { %v289_v25 = vadd.f32 %v288_v23, %v287_v21  ;;  %v282_v26 = vadd.f32 %v281_v24, %v280_v22 }
  0xf1   : > { %731 = vpush %v282_v26  ;;  %v290_v27 = vrot.slane %v289_v25, 1 }
  0xf3   : > { %v291_v28 = vadd.f32 %v290_v27, %v289_v25 }
  0xf5   : > { %733 = vpush %v291_v28 }
 0x10c   : > { %v304_v29 = vpop.xlane.xlu1 %303 }
 0x10d   : > { %v305_v30 = vrot.slane %v304_v29, 4 }
 0x10f   : > { %v306_v31 = vadd.f32 %v305_v30, %v304_v29 }
 0x111   : > { %v307_v32 = vrot.slane %v306_v31, 2 }
 0x113   : > { %v308_v33 = vadd.f32 %v307_v32, %v306_v31 }
 0x115   : > { %v309_v34 = vrot.slane %v308_v33, 1 }
 0x117   : > { %v310_v35 = vadd.f32 %v309_v34, %v308_v33 }
 0x119   : > { %735 = vpush %v310_v35 }
 0x122   : > { %s732_s15 = spop %731 }
 0x123   : > { %p324_p3 = scmp.gt.f32.partialorder %s732_s15, 0.0  ;;  %v317_v38 = vstv %s732_s15 }
 0x124   : > { %v318_v39 = vsel %vm316_vm2, %v317_v38, 0.0  ;;  %v704_v44 = vld [vmem:[%s1196_s30 + $0x8] sm:$0xff] (%p324_p3)  ;;  %v705_v45 = vld [vmem:[%s1196_s30 + $0x10] sm:$0xff] (%p324_p3)  ;;  %v706_v51 = vld [vmem:[%s1196_s30 + $0x18] sm:$0xff] (%p324_p3)  ;;  %v376_v63 = vstv (%p324_p3), %s1239_s22  ;;  %vm330_vm7 = vcmp.ge.f32.partialorder (%p324_p3), %v1218_v1, 0.0  ;;  %vm547_vm1 = vcmp.eq.s32.totalorder (%p324_p3), %v1244_v37, 4 }
 0x125   : > { %v354_v46 = vand.u32 (%p324_p3), 2147483647, %v704_v44  ;;  %v364_v47 = vand.u32 (%p324_p3), 2147483647, %v705_v45  ;;  %v707_v53 = vld [vmem:[%s1196_s30 + $0x20] sm:$0xff] (%p324_p3)  ;;  %v1260_v54 = vsel (%p324_p3), %vm269_vm0, %v706_v51, 0.0  ;;  %v380_v2 = vstv (%p324_p3), %s1242_s20 }
 0x126   : > { %s734_s9 = spop %733  ;;  %v1264_v55 = vsel (%p324_p3), %vm269_vm0, %v707_v53, 0.0  ;;  %v374_v56 = vmul.f32 (%p324_p3), 1.442695, %v1260_v54  ;;  %v1271_v3 = vld [vmem:[%s1204_s29 + $0x18] sm:$0xff] (%p324_p3)  ;;  %v1274_v5 = vld [vmem:[%s1204_s29 + $0x20] sm:$0xff] (%p324_p3)  ;;  %v1282_v11 = vld [vmem:[%s1204_s29 + $0x8] sm:$0xff] (%p324_p3) }
 0x127   : > { %v319_v40 = vstv %s734_s9  ;;  %v355_v48 = vsub.f32 (%p324_p3), 0.0, %v354_v46  ;;  %v365_v49 = vsub.f32 (%p324_p3), 0.0, %v364_v47  ;;  %v378_v57 = vmul.f32 (%p324_p3), 1.442695, %v1264_v55  ;;  %v1286_v14 = vld [vmem:[%s1204_s29 + $0x10] sm:$0xff] (%p324_p3) }
 0x128   : > { %v320_v41 = vsel %vm315_vm3, %v319_v40, %v318_v39  ;;  %v384_v10 = vmul.f32 (%p324_p3), 0.5, %v1271_v3  ;;  %v394_v12 = vmul.f32 (%p324_p3), 0.5, %v1274_v5  ;;  %vm361_vm5 = vcmp.ge.f32.partialorder (%p324_p3), %v704_v44, 0.0 }
 0x129   : > { %v356_v50 = vmul.f32 (%p324_p3), 1.442695, %v355_v48  ;;  %v366_v52 = vmul.f32 (%p324_p3), 1.442695, %v365_v49  ;;  %vm371_vm6 = vcmp.ge.f32.partialorder (%p324_p3), %v705_v45, 0.0  ;;  %v405_v22 = vmul.f32 (%p324_p3), %v1274_v5, %v1271_v3 }
 0x12a   : > { %v385_v20 = vadd.f32 (%p324_p3), %v1282_v11, %v384_v10  ;;  %v388_v21 = vsub.f32 (%p324_p3), %v1282_v11, %v384_v10  ;;  %v395_v24 = vadd.f32 (%p324_p3), %v1286_v14, %v394_v12  ;;  %v398_v25 = vsub.f32 (%p324_p3), %v1286_v14, %v394_v12  ;;  %v1317_v12 = vld [vmem:[%s1196_s30 + $0x60] sm:$0xff] (%p324_p3) }
 0x12b   : > { %834 = vpow2.f32 (%p324_p3), %v356_v50  ;;  %v406_v38 = vand.u32 (%p324_p3), 2147483647, %v405_v22  ;;  %vm548_vm0 = vcmp.eq.s32.totalorder (%p324_p3), %v1244_v37, 5  ;;  %vm546_vm2 = vcmp.eq.s32.totalorder (%p324_p3), %v1244_v37, 2 }
 0x12c   : > { %836 = vpow2.f32 (%p324_p3), %v366_v52 }
 0x12d   : > { %838 = vpow2.f32 (%p324_p3), %v374_v56  ;;  %v713_v56 = vld [vmem:[%s1196_s30 + $0x28] sm:$0xff] (%p324_p3) }
 0x12e   : > { %840 = vpow2.f32 (%p324_p3), %v378_v57  ;;  %v714_v57 = vld [vmem:[%s1196_s30 + $0x30] sm:$0xff] (%p324_p3) }
 0x138   : > { %v835_v58 = vpop.eup (%p324_p3), %834 }
 0x139   : > { %v837_v59 = vpop.eup (%p324_p3), %836  ;;  %v358_v60 = vadd.f32 (%p324_p3), 1.0, %v835_v58 }
 0x13a   : > { %v368_v61 = vadd.f32 (%p324_p3), 1.0, %v837_v59  ;;  %v839_v62 = vpop.eup (%p324_p3), %838 }
 0x13b   : > { %842 = vrcp.f32 (%p324_p3), %v358_v60  ;;  %v841_v0 = vpop.eup (%p324_p3), %840  ;;  %v377_v6 = vmul.f32 (%p324_p3), %v839_v62, %v376_v63  ;;  %v717_v62 = vld [vmem:[%s1196_s30 + $0x48] sm:$0xff] (%p324_p3) }
 0x13c   : > { %844 = vrcp.f32 (%p324_p3), %v368_v61  ;;  %v381_v7 = vmul.f32 (%p324_p3), %v841_v0, %v380_v2  ;;  %v718_v0 = vld [vmem:[%s1196_s30 + $0x50] sm:$0xff] (%p324_p3) }
 0x13d   : > { %v382_v15 = vmul.f32 (%p324_p3), 0.5, %v377_v6  ;;  %846 = vrcp.f32 (%p324_p3), %v1231_v9 }
 0x13e   : > { %v392_v18 = vmul.f32 (%p324_p3), 0.5, %v381_v7  ;;  %v403_v26 = vmul.f32 (%p324_p3), %v381_v7, %v377_v6  ;;  %v1313_v7 = vld [vmem:[%s1196_s30 + $0x58] sm:$0xff] (%p324_p3) }
 0x140   : > { %v404_v36 = vand.u32 (%p324_p3), 2147483647, %v403_v26 }
 0x148   : > { %v843_v13 = vpop.eup (%p324_p3), %842 }
 0x149   : > { %327 = sbr.rel (!%p324_p3) target bundleno = 809 (0x329), region = 48  ;;  %v845_v16 = vpop.eup (%p324_p3), %844  ;;  %v362_v17 = vmul.f32 (%p324_p3), %v843_v13, %v835_v58  ;;  %v465_v58 = vmax.f32 (%p324_p3), %v713_v56, %v714_v57 }
 0x14a   : > { %s736_s18 = spop %735  ;;  %v372_v19 = vmul.f32 (%p324_p3), %v845_v16, %v837_v59  ;;  %v847_v47 = vpop.eup (%p324_p3), %846  ;;  %v715_v59 = vld [vmem:[%s1196_s30 + $0x38] sm:$0xff] (%p324_p3) }
 0x14b   : > { %v321_v42 = vstv %s736_s18  ;;  %v1292_v23 = vsel (%p324_p3), %vm361_vm5, %v843_v13, %v362_v17  ;;  %v331_v48 = vmul.f32 (%p324_p3), %v847_v47, %v1228_v8  ;;  %v468_v60 = vmax.f32 (%p324_p3), %v465_v58, %v715_v59  ;;  %v716_v8 = vld [vmem:[%s1196_s30 + $0x40] sm:$0xff] (%p324_p3) }
 0x14c   : > { %v322_v43 = vsel %vm314_vm4, %v321_v42, %v320_v41  ;;  %v1296_v27 = vsel (%p324_p3), %vm371_vm6, %v845_v16, %v372_v19  ;;  %v383_v28 = vadd.f32 (%p324_p3), %v382_v15, %v1292_v23  ;;  %v387_v29 = vsub.f32 (%p324_p3), %v1292_v23, %v382_v15 }
 0x14d   : > { %323 = vst [vmem:[%s1250_s19] sm:$0xff] %v322_v43  ;;  %v393_v30 = vadd.f32 (%p324_p3), %v392_v18, %v1296_v27  ;;  %v397_v31 = vsub.f32 (%p324_p3), %v1296_v27, %v392_v18  ;;  %v407_v43 = vadd.f32 (%p324_p3), %v406_v38, %v404_v36  ;;  %v332_v50 = vsel (%p324_p3), %vm330_vm7, %v847_v47, %v331_v48 }
 0x14e   : > { %v386_v32 = vmin.f32 %v383_v28, %v385_v20  ;;  %v389_v33 = vmax.f32 %v387_v29, %v388_v21  ;;  %v471_v61 = vmax.f32 %v468_v60, %v716_v8 }
 0x14f   : > { %v396_v34 = vmin.f32 %v393_v30, %v395_v24  ;;  %v399_v35 = vmax.f32 %v397_v31, %v398_v25 }
 0x150   : > { %v390_v39 = vsub.f32 %v386_v32, %v389_v33  ;;  %v474_v1 = vmax.f32 %v471_v61, %v717_v62 }
 0x151   : > { %v400_v40 = vsub.f32 %v396_v34, %v399_v35 }
 0x152   : > { %v391_v41 = vmax.f32 %v390_v39, 0.0  ;;  %v477_v6 = vmax.f32 %v474_v1, %v718_v0 }
 0x153   : > { %v401_v42 = vmax.f32 %v400_v40, 0.0 }
 0x154   : > { %v480_v10 = vmax.f32 %v477_v6, %v1313_v7 }
 0x155   : > { %v402_v44 = vmul.f32 %v401_v42, %v391_v41 }
 0x156   : > { %v1320_v13 = vmax.f32 %v480_v10, %v1317_v12 }
 0x157   : > { %v408_v45 = vsub.f32 %v407_v43, %v402_v44 }
 0x158   : > { %v484_v15 = vsub.f32 %v713_v56, %v1320_v13  ;;  %v490_v16 = vsub.f32 %v714_v57, %v1320_v13  ;;  %v496_v19 = vsub.f32 %v715_v59, %v1320_v13  ;;  %v502_v21 = vsub.f32 %v716_v8, %v1320_v13 }
 0x159   : > { %v409_v46 = vadd.f32 1e-06, %v408_v45  ;;  %v508_v24 = vsub.f32 %v717_v62, %v1320_v13  ;;  %v514_v26 = vsub.f32 %v718_v0, %v1320_v13  ;;  %v520_v29 = vsub.f32 %v1313_v7, %v1320_v13 }
 0x15a   : > { %v485_v17 = vmul.f32 1.442695, %v484_v15  ;;  %v491_v18 = vmul.f32 1.442695, %v490_v16  ;;  %v497_v20 = vmul.f32 1.442695, %v496_v19  ;;  %v526_v31 = vsub.f32 %v1317_v12, %v1320_v13 }
 0x15b   : > { %848 = vrcp.f32 %v409_v46  ;;  %v503_v22 = vmul.f32 1.442695, %v502_v21  ;;  %v509_v25 = vmul.f32 1.442695, %v508_v24  ;;  %v515_v28 = vmul.f32 1.442695, %v514_v26 }
 0x15c   : > { %850 = vpow2.f32 %v485_v17  ;;  %v521_v30 = vmul.f32 1.442695, %v520_v29  ;;  %v527_v32 = vmul.f32 1.442695, %v526_v31  ;;  %v430_v24 = vsub.f32 %v1292_v23, %v1282_v11 }
 0x15d   : > { %852 = vpow2.f32 %v491_v18 }
 0x15e   : > { %854 = vpow2.f32 %v497_v20  ;;  %v444_v26 = vmul.f32 %v430_v24, %v430_v24 }
 0x15f   : > { %856 = vpow2.f32 %v503_v22 }
 0x160   : > { %858 = vpow2.f32 %v509_v25  ;;  %v431_v25 = vsub.f32 %v1296_v27, %v1286_v14 }
 0x161   : > { %860 = vpow2.f32 %v515_v28 }
 0x162   : > { %862 = vpow2.f32 %v521_v30  ;;  %v445_v28 = vmul.f32 %v431_v25, %v431_v25 }
 0x163   : > { %864 = vpow2.f32 %v527_v32 }
 0x168   : > { %v849_v49 = vpop.eup %848 }
 0x169   : > { %v411_v51 = vmul.f32 %v849_v49, %v402_v44  ;;  %v851_v33 = vpop.eup %850  ;;  %v712_v49 = vld [vmem:[%s1204_s29 + $0x28] sm:$0xff] }
 0x16a   : > { %v853_v34 = vpop.eup %852 }
 0x16b   : > { %v412_v52 = vsub.f32 %v411_v51, %v332_v50  ;;  %v855_v35 = vpop.eup %854  ;;  %v493_v36 = vadd.f32 %v853_v34, %v851_v33  ;;  %v737_v50 = vtrunc.f32 %v712_v49  ;;  %v446_v33 = vadd.f32 %v445_v28, %v444_v26 }
 0x16c   : > { %v857_v38 = vpop.eup %856 }
 0x16d   : > { %v413_v9 = vmul.f32 %v412_v52, %v412_v52  ;;  %v499_v39 = vadd.f32 %v855_v35, %v493_v36  ;;  %v859_v40 = vpop.eup %858  ;;  %v738_v51 = vcvt.f32.s32 %v737_v50  ;;  %v555_v50 = vld [vmem:[%s1250_s19] sm:$0xff] }
 0x16e   : > { %v861_v42 = vpop.eup %860 }
 0x16f   : > { %v414_v53 = vmul.f32 %v1225_v4, %v413_v9  ;;  %v505_v41 = vadd.f32 %v857_v38, %v499_v39  ;;  %v863_v44 = vpop.eup %862  ;;  %vm488_vm8 = vcmp.eq.s32.totalorder %v738_v51, 0  ;;  %vm494_vm9 = vcmp.eq.s32.totalorder %v738_v51, 1 }
 0x170   : > { %v865_v46 = vpop.eup %864  ;;  %v489_v52 = vsel %vm488_vm8, %v713_v56, 0.0  ;;  %vm500_vm10 = vcmp.eq.s32.totalorder %v738_v51, 2  ;;  %vm506_vm11 = vcmp.eq.s32.totalorder %v738_v51, 3  ;;  %vm512_vm12 = vcmp.eq.s32.totalorder %v738_v51, 4 }
 0x171   : > { %415 = vadd.xlane.f32.xlu0 %v414_v53  ;;  %v511_v43 = vadd.f32 %v859_v40, %v505_v41  ;;  %v495_v9 = vsel %vm494_vm9, %v714_v57, %v489_v52  ;;  %vm518_vm13 = vcmp.eq.s32.totalorder %v738_v51, 5  ;;  %vm524_vm14 = vcmp.eq.s32.totalorder %v738_v51, 6 }
 0x172   : > { %v501_v53 = vsel %vm500_vm10, %v715_v59, %v495_v9  ;;  %vm530_vm15 = vcmp.eq.s32.totalorder %v738_v51, 7 }
 0x173   : > { %v517_v45 = vadd.f32 %v861_v42, %v511_v43  ;;  %v507_v58 = vsel %vm506_vm11, %v716_v8, %v501_v53 }
 0x174   : > { %v513_v61 = vsel %vm512_vm12, %v717_v62, %v507_v58 }
 0x175   : > { %v523_v47 = vadd.f32 %v863_v44, %v517_v45  ;;  %v519_v1 = vsel %vm518_vm13, %v718_v0, %v513_v61 }
 0x176   : > { %v525_v10 = vsel %vm524_vm14, %v1313_v7, %v519_v1 }
 0x177   : > { %v529_v48 = vadd.f32 %v865_v46, %v523_v47  ;;  %v531_v56 = vsel %vm530_vm15, %v1317_v12, %v525_v10 }
 0x179   : > { %866 = vlog2.f32 %v529_v48 }
 0x17a   : > { %868 = vrcp.f32 %v376_v63 }
 0x17b   : > { %870 = vrcp.f32 %v380_v2 }
 0x186   : > { %v867_v60 = vpop.eup %866 }
 0x187   : > { %v533_v6 = vmul.f32 0.6931472, %v867_v60  ;;  %v869_v7 = vpop.eup %868 }
 0x188   : > { %v871_v20 = vpop.eup %870 }
 0x189   : > { %v534_v57 = vadd.f32 %v533_v6, %v1320_v13 }
 0x18b   : > { %v535_v15 = vsub.f32 %v534_v57, %v531_v56 }
 0x18d   : > { %v536_v59 = vmul.f32 %v1225_v4, %v535_v15 }
 0x18f   : > { %537 = vadd.xlane.f32.xlu1 %v536_v59 }
 0x1fa   : > { %v416_v8 = vpop.xlane.xlu0 %415 }
 0x1fb   : > { %v417_v62 = vrot.slane %v416_v8, 4 }
 0x1fd   : > { %v418_v0 = vadd.f32 %v417_v62, %v416_v8 }
 0x1ff   : > { %v419_v16 = vrot.slane %v418_v0, 2 }
 0x201   : > { %v420_v17 = vadd.f32 %v419_v16, %v418_v0 }
 0x203   : > { %v421_v18 = vrot.slane %v420_v17, 1 }
 0x205   : > { %v422_v19 = vadd.f32 %v421_v18, %v420_v17 }
 0x207   : > { %739 = vpush %v422_v19 }
 0x208   : > { %741 = vpush %v869_v7 }
 0x209   : > { %743 = vpush %v871_v20 }
 0x218   : > { %v538_v23 = vpop.xlane.xlu1 %537 }
 0x219   : > { %v539_v14 = vrot.slane %v538_v23, 4 }
 0x21b   : > { %v540_v27 = vadd.f32 %v539_v14, %v538_v23 }
 0x21d   : > { %v541_v39 = vrot.slane %v540_v27, 2 }
 0x21f   : > { %v542_v43 = vadd.f32 %v541_v39, %v540_v27 }
 0x238   : > { %s1341_s26 = spop %739 }
 0x239   : > { %s742_s5 = spop %741  ;;  %v553_v51 = vstv %s1341_s26 }
 0x23a   : > { %v432_v12 = vstv %s742_s5  ;;  %s744_s8 = spop %743 }
 0x23b   : > { %v433_v63 = vmul.f32 %v1271_v3, %v432_v12  ;;  %v438_v2 = vstv %s744_s8 }
 0x23c   : > { %v439_v13 = vmul.f32 %v1274_v5, %v438_v2 }
 0x23d   : > { %v434_v21 = vadd.f32 1e-16, %v433_v63 }
 0x23e   : > { %v440_v22 = vadd.f32 1e-16, %v439_v13 }
 0x23f   : > { %872 = vlog2.f32 %v434_v21 }
 0x240   : > { %874 = vlog2.f32 %v440_v22 }
 0x24c   : > { %v873_v29 = vpop.eup %872 }
 0x24d   : > { %v875_v30 = vpop.eup %874  ;;  %v436_v31 = vmul.f32 0.6931472, %v873_v29 }
 0x24e   : > { %v442_v32 = vmul.f32 0.6931472, %v875_v30 }
 0x24f   : > { %v437_v3 = vsub.f32 %v1260_v54, %v436_v31 }
 0x250   : > { %v443_v5 = vsub.f32 %v1264_v55, %v442_v32  ;;  %v543_v55 = vrot.slane %v542_v43, 1 }
 0x251   : > { %v447_v34 = vmul.f32 %v437_v3, %v437_v3 }
 0x252   : > { %v449_v35 = vmul.f32 %v443_v5, %v443_v5  ;;  %v544_v47 = vadd.f32 %v543_v55, %v542_v43 }
 0x253   : > { %v448_v36 = vadd.f32 %v447_v34, %v446_v33 }
 0x255   : > { %v450_v38 = vadd.f32 %v449_v35, %v448_v36 }
 0x257   : > { %v451_v11 = vmul.f32 %v1225_v4, %v450_v38 }
 0x259   : > { %452 = vadd.xlane.f32.xlu0 %v451_v11 }
 0x2e2   : > { %v453_v40 = vpop.xlane.xlu0 %452 }
 0x2e3   : > { %v454_v41 = vrot.slane %v453_v40, 4 }
 0x2e5   : > { %v455_v42 = vadd.f32 %v454_v41, %v453_v40 }
 0x2e7   : > { %v456_v44 = vrot.slane %v455_v42, 2 }
 0x2e9   : > { %v457_v54 = vadd.f32 %v456_v44, %v455_v42 }
 0x2eb   : > { %v458_v45 = vrot.slane %v457_v54, 1 }
 0x2ed   : > { %v459_v46 = vadd.f32 %v458_v45, %v457_v54 }
 0x2ef   : > { %745 = vpush %v459_v46 }
 0x2f0   : > { %747 = vpush %v544_v47 }
 0x320   : > { %s746_s27 = spop %745 }
 0x321   : > { %v551_v4 = vstv %s746_s27  ;;  %s748_s10 = spop %747 }
 0x322   : > { %v549_v48 = vstv %s748_s10 }
 0x323   : > { %v550_v49 = vsel %vm548_vm0, %v549_v48, 0.0 }
 0x324   : > { %v552_v52 = vsel %vm547_vm1, %v551_v4, %v550_v49 }
 0x325   : > { %v554_v9 = vsel %vm546_vm2, %v553_v51, %v552_v52 }
 0x326   : > { %v556_v53 = vadd.f32 %v555_v50, %v554_v9 }
 0x328   : > { %557 = vst [vmem:[%s1250_s19] sm:$0xff] %v556_v53 }
 0x329 PF: > { %s571_s25 = scalar_lea.hbm %s1401_s3, %s1236_s21  ;;  %s573_s30 = sshll.u32 %s1250_s19, 4  ;;  %s574_s30 = int_to_ptr.vmem [resolvable:$true] %s573_s30 }
 0x32a   : > { %s559_s0 = scalar_lea.sflag [#allocation4], %s1192_s6  ;;  %s947_s28 = scalar_lea.vmem %s574_s30, 128 }
 0x32b   : > { %p948_p7 = scmp.ne.s32.totalorder %s574_s30, %s947_s28  ;;  %p1418_p12 = scmp.ne.s32.totalorder %s1408_s23, 0 }
 0x32c   : > { %s1043_s29 = smov [#allocation9]  }
 0x32d   : > { %p949_p1 = pnand %p948_p7, %p1418_p12  ;;  %s951_s22 = sshll.u32 %s1043_s29, 4  ;;  %s952_s22 = int_to_ptr.vmem [resolvable:$false] %s951_s22 }
 0x32e   : > { %s953_s7 = scalar_lea.vmem %s952_s22, 256  ;;  %p954_p11 = scmp.lt.s32.totalorder %s574_s30, %s952_s22 }
 0x32f   : > { %p950_p9 = pneg %p949_p1  ;;  %p955_p13 = scmp.lt.s32.totalorder %s953_s7, %s947_s28 }
 0x331   : > { %p956_p0 = por %p955_p13, %p954_p11 }
 0x333   : > { %p957_p8 = pnand %p956_p0, %p950_p9 }
 0x335   : > { %960 = shalt.err (!%p957_p8)
}
 0x336   : > { %s961_s20 = scalar_lea.hbm %s571_s25, 128  ;;  %s965_s15 = scalar_lea.hbm %s1401_s3, 384 }
 0x337   : > { %p962_p2 = scmp.ne.s32.totalorder %s571_s25, %s961_s20  ;;  %p966_p5 = scmp.lt.s32.totalorder %s571_s25, %s1401_s3 }
 0x338   : > { %p967_p10 = scmp.lt.s32.totalorder %s965_s15, %s961_s20 }
 0x339   : > { %p963_p4 = pnand %p962_p2, %p1418_p12 }
 0x33a   : > { %p968_p3 = por %p967_p10, %p966_p5 }
 0x33b   : > { %p964_p6 = pneg %p963_p4 }
 0x33d   : > { %p969_p7 = pnand %p968_p3, %p964_p6 }
 0x33f   : > { %972 = shalt.err (!%p969_p7)
}
 0x340   : > { %757 = dma.vmem_to_hbm [thread:$0]  (%p1418_p12), %s574_s30, 128, %s571_s25, %s559_s0  }
 0x341 PF: > { %p777_p1 = scmp.ge.s32.totalorder %s1035_s17, 2  ;;  %s585_s18 = sand.u32 1, %s1015_s12  }
 0x342   : > { %p1419_p9 = scmp.ne.s32.totalorder %s1409_s24, 0  ;;  %s586_s19 = scalar_lea.sflag [#allocation4], %s585_s18 }
 0x344   : > { %p771_p11 = pnand %p777_p1, %p1419_p9 }
 0x346   : > { %p772_p13 = pneg %p771_p11 }
 0x348   : > { %1010 = dma.done.wait (%p772_p13), %s586_s19, 128  }
 0x349   : > { %1012 = vsyncadd (%p772_p13), %s586_s19, 4294967168  ;;  %s23_s17 = sadd.s32 1, %s1035_s17   ;;  %s1420_s26 = sld [smem:[#allocation15_spill]] }
 0x34a   : > { %p20_p0 = scmp.ge.s32.totalorder %s23_s17, 5   ;;  %s1421_s23 = sld [smem:[#allocation14_spill]] }
 0x34b   : > { %s1422_s12 = smov %s1019_s13  ;;  %s1423_s13 = smov %s1023_s14 }
 0x34c   : > { %s1425_s15 = smov %s1031_s16  ;;  %22 = sbr.rel (!%p20_p0) target bundleno = 12 (0xc), region = 116 }
 0x34f   : > { %s1424_s14 = smov %s1420_s26 }
 0x350   : > { %s1426_s16 = smov %s1421_s23 }
 0x351   :  { %591 = vsyncpa [#allocation3], 1 }
 0x352   :  { %593 = vsyncpa [#allocation3 + $0x1], 1 }
 0x353   :  { %594 = vsyncpa [#allocation7], 1 }
 0x354   :  { %596 = vsyncpa [#allocation7 + $0x1], 1 }
 0x355   :  { %597 = vsyncpa [#allocation4], 1 }
 0x356   :  { %599 = vsyncpa [#allocation4 + $0x1], 1 }
 0x357   :  { %600 = vsyncpa [#allocation5], 1 }
 0x358   :  { %602 = vsyncpa [#allocation5 + $0x1], 1 }

</bundles_post_ra>
